<compile_context>
chip_gen: v7x
topology: tpu7x:2x2x1
jax: 0.10.0
libtpu: 0.0.40
codegen_flags: <defaults>
</compile_context>

<pallas_src>
import jax
import jax.numpy as jnp
from jax.experimental import pallas as pl
from jax.experimental.pallas import tpu as pltpu

BN_EPS = 1e-5
_LANES = 128


def _decoder_kernel(x_ref, w_ref, b_ref, o_ref):
    """Fused decoder on lane-packed activations.

    x_ref : (tile, L)   -- P logical rows packed along the 128-lane axis
    w_ref : (3, L, L)   -- block-diagonal weights (Linear0, Linear1, head with BN folded)
    b_ref : (3, L)      -- matching (lane-tiled) biases
    o_ref : (tile, L)
    """
    x = x_ref[...]

    # MLP layer 0: Linear + ReLU (Dropout is identity in eval mode)
    h = jnp.dot(x, w_ref[0], preferred_element_type=jnp.float32) + b_ref[0:1, :]
    h = jnp.maximum(h, 0.0)

    # MLP layer 1: Linear + ReLU
    h = jnp.dot(h, w_ref[1], preferred_element_type=jnp.float32) + b_ref[1:2, :]
    h = jnp.maximum(h, 0.0)

    # Head Linear (eval-mode BatchNorm already folded into w/b in the wrapper)
    y = jnp.dot(h, w_ref[2], preferred_element_type=jnp.float32) + b_ref[2:3, :]

    o_ref[...] = y.astype(o_ref.dtype)


def uni_rnn_decoder_forward(x, params, *, row_tile=1024):
    """x: (N, hidden_dim) float32. params: dict of weights (see init_params).

    row_tile is in *packed* rows (each packed row holds 128 // hidden_dim logical rows).
    """
    n, hidden_dim = x.shape
    mlp_dim = params["w1"].shape[1]
    out_dim = params["w3"].shape[1]
    assert hidden_dim == mlp_dim == out_dim, "stacked-weight kernel assumes equal dims"

    # ---- lane packing factor: pack P logical rows per 128-lane row -------------------
    P = _LANES // hidden_dim if _LANES % hidden_dim == 0 else 1
    L = P * hidden_dim  # lane width of packed activations (128 for hidden_dim=32)

    # ---- fold eval-mode BatchNorm into the head Linear (one-time, wrapper side) ------
    scale = params["bn_gamma"] * jax.lax.rsqrt(params["bn_var"] + BN_EPS)      # (1, out)
    w3 = params["w3"] * scale                                                  # (mlp, out)
    b3 = (params["b3"] - params["bn_mean"]) * scale + params["bn_beta"]        # (1, out)

    # ---- block-diagonal weights / lane-tiled biases, stacked into single inputs ------
    eye_p = jnp.eye(P, dtype=x.dtype)

    def block_diag(w):
        return jnp.kron(eye_p, w)                       # (L, L)

    def tile_bias(b):
        return jnp.tile(b.reshape(-1), P)               # (L,)

    w_stack = jnp.stack([block_diag(params["w1"]),
                         block_diag(params["w2"]),
                         block_diag(w3)])               # (3, L, L)
    b_stack = jnp.stack([tile_bias(params["b1"]),
                         tile_bias(params["b2"]),
                         tile_bias(b3)])                # (3, L)

    # ---- choose tile (packed rows) and pad the batch so the grid divides evenly ------
    r = -(-n // P)                     # packed rows needed (ceil)
    if r <= row_tile:
        tile = r                       # single block == full array -> always legal
        r_pad = r
    else:
        tile = max(8, (min(row_tile, r) // 8) * 8)      # sublane-aligned tile
        r_pad = ((r + tile - 1) // tile) * tile
    n_pad = r_pad * P
    if n_pad != n:
        x = jnp.pad(x, ((0, n_pad - n), (0, 0)))
    xp = x.reshape(r_pad, L)           # row-major: 4 logical rows per packed row

    grid = (r_pad // tile,)

    out_p = pl.pallas_call(
        _decoder_kernel,
        out_shape=jax.ShapeDtypeStruct((r_pad, L), x.dtype),
        grid=grid,
        in_specs=[
            pl.BlockSpec((tile, L), lambda i: (i, 0)),        # packed activations
            pl.BlockSpec((3, L, L), lambda i: (0, 0, 0)),     # stacked weights (resident)
            pl.BlockSpec((3, L), lambda i: (0, 0)),           # stacked biases  (resident)
        ],
        out_specs=pl.BlockSpec((tile, L), lambda i: (i, 0)),
        compiler_params=pltpu.CompilerParams(
            dimension_semantics=("parallel",)),
    )(xp, w_stack, b_stack)

    return out_p.reshape(n_pad, out_dim)[:n]


def init_params(key, hidden_dim, mlp_dim, out_dim):
    """Deterministic synthetic init. Weights stored as (in, out)."""
    ks = jax.random.split(key, 8)
    scale = 0.1
    params = {
        "w1": scale * jax.random.normal(ks[0], (hidden_dim, mlp_dim), jnp.float32),
        "b1": scale * jax.random.normal(ks[1], (1, mlp_dim), jnp.float32),
        "w2": scale * jax.random.normal(ks[2], (mlp_dim, mlp_dim), jnp.float32),
        "b2": scale * jax.random.normal(ks[3], (1, mlp_dim), jnp.float32),
        "w3": scale * jax.random.normal(ks[4], (mlp_dim, out_dim), jnp.float32),
        "b3": scale * jax.random.normal(ks[5], (1, out_dim), jnp.float32),
        # BatchNorm1d affine + running stats (eval mode), made non-trivial:
        "bn_gamma": 1.0 + 0.1 * jax.random.normal(ks[6], (1, out_dim), jnp.float32),
        "bn_beta": 0.1 * jax.random.normal(ks[7], (1, out_dim), jnp.float32),
        "bn_mean": jnp.linspace(-0.05, 0.05, out_dim, dtype=jnp.float32).reshape(1, out_dim),
        "bn_var": jnp.linspace(0.9, 1.1, out_dim, dtype=jnp.float32).reshape(1, out_dim),
    }
    return params


def reference_forward(x, p):
    """Pure-JAX reference matching the PyTorch eval-mode forward (unfused BN)."""
    h = jnp.maximum(x @ p["w1"] + p["b1"], 0.0)
    h = jnp.maximum(h @ p["w2"] + p["b2"], 0.0)
    y = h @ p["w3"] + p["b3"]
    y = (y - p["bn_mean"]) / jnp.sqrt(p["bn_var"] + BN_EPS) * p["bn_gamma"] + p["bn_beta"]
    return y


if __name__ == "__main__":
    hidden_dim = 32
    mlp_dim = 32          # dec_mlp_dim
    out_dim = hidden_dim  # map_to_one=False
    batch = 16

    key = jax.random.PRNGKey(0)
    k_x, k_p, k_x2 = jax.random.split(key, 3)
    params = init_params(k_p, hidden_dim, mlp_dim, out_dim)

    # Small batch: single full-array block path.
    x = jax.random.normal(k_x, (batch, hidden_dim), jnp.float32)
    out = jax.block_until_ready(uni_rnn_decoder_forward(x, params))
    ref = reference_forward(x, params)
    assert out.shape == (batch, out_dim)
    assert jnp.allclose(out, ref, atol=1e-4, rtol=1e-4), "mismatch vs reference (small batch)"

    # Batch that exercises padding + multi-step grid (packed rows not divisible, tile=8).
    batch2 = 100
    x2 = jax.random.normal(k_x2, (batch2, hidden_dim), jnp.float32)
    out2 = jax.block_until_ready(uni_rnn_decoder_forward(x2, params, row_tile=8))
    ref2 = reference_forward(x2, params)
    assert out2.shape == (batch2, out_dim)
    assert jnp.allclose(out2, ref2, atol=1e-4, rtol=1e-4), "mismatch vs reference (padded batch)"

    # TODO(synk): dropout is identity (eval mode); training-mode dropout and training-mode
    # (batch-statistics) BatchNorm are not reproduced.
    print("KERNEL_OK")
</pallas_src>

<mosaic_0001>
module attributes {stable_mosaic.version = 11 : i64} {
  func.func @_decoder_kernel(%arg0: i32, %arg1: memref<4x128xf32, #tpu.memory_space<vmem>>, %arg2: memref<3x128x128xf32, #tpu.memory_space<vmem>>, %arg3: memref<3x128xf32, #tpu.memory_space<vmem>>, %arg4: memref<4x128xf32, #tpu.memory_space<vmem>>) attributes {dimension_semantics = [#tpu.dimension_semantics<parallel>], iteration_bounds = array<i64: 1>, scalar_prefetch = 0 : i64, scratch_operands = 0 : i64, tpu.core_type = #tpu.core_type<tc>, window_params = [{transform_indices = @transform_0, window_bounds = array<i64: 4, 128>}, {pipeline_mode = #tpu.pipeline_mode<synchronous>, transform_indices = @transform_1, window_bounds = array<i64: 3, 128, 128>}, {pipeline_mode = #tpu.pipeline_mode<synchronous>, transform_indices = @transform_2, window_bounds = array<i64: 3, 128>}, {transform_indices = @transform_3, window_bounds = array<i64: 4, 128>}]} {
    %c0 = arith.constant 0 : index
    %c0_0 = arith.constant 0 : index
    %0 = vector.load %arg1[%c0, %c0_0] : memref<4x128xf32, #tpu.memory_space<vmem>>, vector<4x128xf32>
    %c0_1 = arith.constant 0 : index
    %c0_2 = arith.constant 0 : index
    %c0_3 = arith.constant 0 : index
    %1 = vector.load %arg2[%c0_1, %c0_2, %c0_3] : memref<3x128x128xf32, #tpu.memory_space<vmem>>, vector<1x128x128xf32>
    %2 = vector.shape_cast %1 : vector<1x128x128xf32> to vector<128x128xf32>
    %cst = arith.constant dense<0.000000e+00> : vector<4x128xf32>
    %3 = tpu.matmul %0, %2, %cst {dimension_numbers = #tpu.dot_dimension_numbers<[1], [0], [0], [1], [0, 0, 1, 1], [], []>} : vector<4x128xf32>, vector<128x128xf32>, vector<4x128xf32> -> vector<4x128xf32>
    %c0_4 = arith.constant 0 : index
    %c0_5 = arith.constant 0 : index
    %4 = vector.load %arg3[%c0_4, %c0_5] : memref<3x128xf32, #tpu.memory_space<vmem>>, vector<1x128xf32>
    %5 = vector.broadcast %4 : vector<1x128xf32> to vector<4x128xf32>
    %6 = arith.addf %3, %5 : vector<4x128xf32>
    %cst_6 = arith.constant 0.000000e+00 : f32
    %7 = vector.broadcast %cst_6 : f32 to vector<4x128xf32>
    %8 = arith.maximumf %6, %7 : vector<4x128xf32>
    %c1 = arith.constant 1 : index
    %c0_7 = arith.constant 0 : index
    %c0_8 = arith.constant 0 : index
    %9 = vector.load %arg2[%c1, %c0_7, %c0_8] : memref<3x128x128xf32, #tpu.memory_space<vmem>>, vector<1x128x128xf32>
    %10 = vector.shape_cast %9 : vector<1x128x128xf32> to vector<128x128xf32>
    %cst_9 = arith.constant dense<0.000000e+00> : vector<4x128xf32>
    %11 = tpu.matmul %8, %10, %cst_9 {dimension_numbers = #tpu.dot_dimension_numbers<[1], [0], [0], [1], [0, 0, 1, 1], [], []>} : vector<4x128xf32>, vector<128x128xf32>, vector<4x128xf32> -> vector<4x128xf32>
    %c1_10 = arith.constant 1 : index
    %c0_11 = arith.constant 0 : index
    %12 = vector.load %arg3[%c1_10, %c0_11] : memref<3x128xf32, #tpu.memory_space<vmem>>, vector<1x128xf32>
    %13 = vector.broadcast %12 : vector<1x128xf32> to vector<4x128xf32>
    %14 = arith.addf %11, %13 : vector<4x128xf32>
    %cst_12 = arith.constant 0.000000e+00 : f32
    %15 = vector.broadcast %cst_12 : f32 to vector<4x128xf32>
    %16 = arith.maximumf %14, %15 : vector<4x128xf32>
    %c2 = arith.constant 2 : index
    %c0_13 = arith.constant 0 : index
    %c0_14 = arith.constant 0 : index
    %17 = vector.load %arg2[%c2, %c0_13, %c0_14] : memref<3x128x128xf32, #tpu.memory_space<vmem>>, vector<1x128x128xf32>
    %18 = vector.shape_cast %17 : vector<1x128x128xf32> to vector<128x128xf32>
    %cst_15 = arith.constant dense<0.000000e+00> : vector<4x128xf32>
    %19 = tpu.matmul %16, %18, %cst_15 {dimension_numbers = #tpu.dot_dimension_numbers<[1], [0], [0], [1], [0, 0, 1, 1], [], []>} : vector<4x128xf32>, vector<128x128xf32>, vector<4x128xf32> -> vector<4x128xf32>
    %c2_16 = arith.constant 2 : index
    %c0_17 = arith.constant 0 : index
    %20 = vector.load %arg3[%c2_16, %c0_17] : memref<3x128xf32, #tpu.memory_space<vmem>>, vector<1x128xf32>
    %21 = vector.broadcast %20 : vector<1x128xf32> to vector<4x128xf32>
    %22 = arith.addf %19, %21 : vector<4x128xf32>
    %c0_18 = arith.constant 0 : index
    %c0_19 = arith.constant 0 : index
    %23 = vector.load %arg4[%c0_18, %c0_19] : memref<4x128xf32, #tpu.memory_space<vmem>>, vector<4x128xf32>
    tpu.vector_store %arg4[%c0_18, %c0_19], %22 {strides = array<i32>} : memref<4x128xf32, #tpu.memory_space<vmem>>, vector<4x128xf32>,
    return
  }
  func.func @transform_0(%arg0: i32) -> (i32, i32) {
    %c0_i32 = arith.constant 0 : i32
    %c0_i32_0 = arith.constant 0 : i32
    return %arg0, %c0_i32 : i32, i32
  }
  func.func @transform_1(%arg0: i32) -> (i32, i32, i32) {
    %c0_i32 = arith.constant 0 : i32
    %c0_i32_0 = arith.constant 0 : i32
    %c0_i32_1 = arith.constant 0 : i32
    %c0_i32_2 = arith.constant 0 : i32
    return %c0_i32, %c0_i32_0, %c0_i32_1 : i32, i32, i32
  }
  func.func @transform_2(%arg0: i32) -> (i32, i32) {
    %c0_i32 = arith.constant 0 : i32
    %c0_i32_0 = arith.constant 0 : i32
    %c0_i32_1 = arith.constant 0 : i32
    return %c0_i32, %c0_i32_0 : i32, i32
  }
  func.func @transform_3(%arg0: i32) -> (i32, i32) {
    %c0_i32 = arith.constant 0 : i32
    %c0_i32_0 = arith.constant 0 : i32
    return %arg0, %c0_i32 : i32, i32
  }
}

</mosaic_0001>

<bundles_post_ra>
// kernel: tpu_custom_call.1
= control target key start
LH: loop header
LB: loop body
LE: loop exit
PB: predicated region body
PF: predicated region fallthrough
CT: control target
= control target key end

     0   :  { %8 = vsyncpa [#allocation3], 0  ;;  %s757_s0 = inlined_call_operand.hbm [shape: f32[4,128], index: 0, kind: input, shape index: {}]   ;;  %s758_s1 = inlined_call_operand.hbm [shape: f32[3,128,128], index: 1, kind: input, shape index: {}]   ;;  %s759_s2 = inlined_call_operand.vmem [shape: f32[3,128], index: 2, kind: input, shape index: {}]   ;;  %s760_s3 = inlined_call_operand.hbm [shape: f32[4,128], index: 3, kind: output, shape index: {}]  }
   0x1   :  { %9 = vsyncpa [#allocation6], 0 }
   0x2   :  { %10 = vsyncpa [#allocation4], 0  ;;  %s647_s12 = smov [#allocation2]   ;;  %s648_s14 = smov [#allocation5]  }
   0x3   :  { %s17_s13 = sshll.u32 %s647_s12, 4  ;;  %s26_s15 = sshll.u32 %s648_s14, 4  ;;  %s18_s13 = int_to_ptr.vmem [resolvable:$true] %s17_s13  ;;  %s675_s15 = int_to_ptr.vmem [resolvable:$true] %s26_s15 }
   0x4   :  { %s575_s18 = scalar_lea.hbm %s757_s0, 64 }
   0x5   :  { %p576_p0 = scmp.ne.s32.totalorder %s757_s0, %s575_s18  ;;  %p579_p1 = scmp.lt.u32.totalorder %s575_s18, %s757_s0 }
   0x7   :  { %p581_p2 = pnand %p579_p1, %p576_p0 }
   0x9   :  { %584 = shalt.err (!%p581_p2)
}
   0xa   :  { %s585_s23 = scalar_lea.vmem %s18_s13, 64  ;;  %p590_p4 = scmp.lt.s32.totalorder %s18_s13, %s18_s13 }
   0xb   :  { %p586_p3 = scmp.ne.s32.totalorder %s18_s13, %s585_s23  ;;  %p591_p5 = scmp.lt.s32.totalorder %s585_s23, %s585_s23 }
   0xd   :  { %p592_p6 = por %p591_p5, %p590_p4 }
   0xf   :  { %p593_p7 = pnand %p592_p6, %p586_p3 }
  0x11   :  { %596 = shalt.err (!%p593_p7)
}
  0x12   :  { %20 = dma.hbm_to_vmem [thread:$0]  %s757_s0, 64, %s18_s13, [#allocation3]  }
  0x13   :  { %s597_s28 = scalar_lea.hbm %s758_s1, 6144 }
  0x14   :  { %p598_p8 = scmp.ne.s32.totalorder %s758_s1, %s597_s28  ;;  %p601_p9 = scmp.lt.u32.totalorder %s597_s28, %s758_s1 }
  0x16   :  { %p603_p10 = pnand %p601_p9, %p598_p8 }
  0x18   :  { %606 = shalt.err (!%p603_p10)
}
  0x19   :  { %s607_s6 = scalar_lea.vmem %s675_s15, 6144  ;;  %p612_p12 = scmp.lt.s32.totalorder %s675_s15, %s675_s15 }
  0x1a   :  { %p608_p11 = scmp.ne.s32.totalorder %s675_s15, %s607_s6  ;;  %p613_p13 = scmp.lt.s32.totalorder %s607_s6, %s607_s6 }
  0x1c   :  { %p614_p0 = por %p613_p13, %p612_p12 }
  0x1e   :  { %p615_p1 = pnand %p614_p0, %p608_p11 }
  0x20   :  { %618 = shalt.err (!%p615_p1)
}
  0x21   :  { %s649_s0 = smov 128   ;;  %s650_s7 = smov 8  }
  0x22   :  { %32 = dma.hbm_to_vmem [thread:$0]  %s758_s1, 6144, %s675_s15, [#allocation6], %s649_s0, %s649_s0, %s650_s7  }
  0x23   :  { %641 = dma.done.wait [#allocation3], 64  }
  0x24   :  { %642 = vsyncadd [#allocation3], 4294967232 }
  0x25   :  { %643 = dma.done.wait [#allocation6], 6144  }
  0x26   :  { %644 = vsyncadd [#allocation6], 4294961152  ;;  %v651_v0 = vmov 0.0|0.0   ;;  %vm652_vm0 = vmmov 0   ;;  %v653_v1 = vmov 0.0   ;;  %v42_v2 = vld [vmem:[#allocation5] sm:$0xff] }
  0x27   :  { %495 = vmatprep.subr.bf16.mxu0 %v651_v0  ;;  %422 = vmatprep.mubr.msk.f32.mxu0 %vm652_vm0, %v653_v1  ;;  %v43_v3 = vld [vmem:[#allocation5 + $0x8] sm:$0xff]  ;;  %v44_v4 = vld [vmem:[#allocation5 + $0x10] sm:$0xff]  ;;  %v45_v6 = vld [vmem:[#allocation5 + $0x18] sm:$0xff]  ;;  %s654_s15 = smov [#allocation7]  }
  0x28   :  { %519 = vmatprep.subr.bf16.mxu1 %v651_v0  ;;  %457 = vmatprep.mubr.msk.f32.mxu1 %vm652_vm0, %v653_v1  ;;  %v496_v5 = vpack.c.bf16 %v43_v3, %v42_v2  ;;  %v499_v7 = vpack.c.bf16 %v45_v6, %v44_v4  ;;  %v46_v8 = vld [vmem:[#allocation5 + $0x20] sm:$0xff]  ;;  %v47_v9 = vld [vmem:[#allocation5 + $0x28] sm:$0xff]  ;;  %v137_v12 = vld [vmem:[#allocation5 + $0x90] sm:$0xff]  ;;  %s326_s16 = sshll.u32 %s654_s15, 4  ;;  %s327_s16 = int_to_ptr.vmem [resolvable:$true] %s326_s16 }
  0x29   :  { %v135_v10 = vld [vmem:[#allocation5 + $0x80] sm:$0xff]  ;;  %v136_v11 = vld [vmem:[#allocation5 + $0x88] sm:$0xff]  ;;  %v138_v13 = vld [vmem:[#allocation5 + $0x98] sm:$0xff]  ;;  %v502_v14 = vpack.c.bf16 %v47_v9, %v46_v8  ;;  %s619_s17 = scalar_lea.vmem %s327_s16, 64  ;;  %p624_p3 = scmp.lt.s32.totalorder %s327_s16, %s327_s16 }
  0x2a   :  { %497 = vmatpush3.bf16.msra.mxu0 %v496_v5  ;;  %v520_v15 = vpack.c.bf16 %v136_v11, %v135_v10  ;;  %v48_v16 = vld [vmem:[#allocation5 + $0x30] sm:$0xff]  ;;  %v49_v17 = vld [vmem:[#allocation5 + $0x38] sm:$0xff]  ;;  %v523_v18 = vpack.c.bf16 %v138_v13, %v137_v12  ;;  %v139_v19 = vld [vmem:[#allocation5 + $0xa0] sm:$0xff]  ;;  %p620_p2 = scmp.ne.s32.totalorder %s327_s16, %s619_s17  ;;  %p625_p4 = scmp.lt.s32.totalorder %s619_s17, %s619_s17 }
  0x2b   :  { %498 = vmatprep.subr.bf16.mxu0 %v651_v0  ;;  %v140_v20 = vld [vmem:[#allocation5 + $0xa8] sm:$0xff]  ;;  %v505_v21 = vpack.c.bf16 %v49_v17, %v48_v16  ;;  %v50_v22 = vld [vmem:[#allocation5 + $0x40] sm:$0xff]  ;;  %v141_v25 = vld [vmem:[#allocation5 + $0xb0] sm:$0xff] }
  0x2c   :  { %521 = vmatpush3.bf16.msra.mxu1 %v520_v15  ;;  %v51_v23 = vld [vmem:[#allocation5 + $0x48] sm:$0xff]  ;;  %v526_v24 = vpack.c.bf16 %v140_v20, %v139_v19  ;;  %v142_v26 = vld [vmem:[#allocation5 + $0xb8] sm:$0xff]  ;;  %v52_v28 = vld [vmem:[#allocation5 + $0x50] sm:$0xff]  ;;  %p626_p5 = por %p625_p4, %p624_p3 }
  0x2d   :  { %522 = vmatprep.subr.bf16.mxu1 %v651_v0  ;;  %v508_v27 = vpack.c.bf16 %v51_v23, %v50_v22  ;;  %v53_v29 = vld [vmem:[#allocation5 + $0x58] sm:$0xff]  ;;  %v529_v30 = vpack.c.bf16 %v142_v26, %v141_v25  ;;  %v143_v31 = vld [vmem:[#allocation5 + $0xc0] sm:$0xff]  ;;  %v144_v32 = vld [vmem:[#allocation5 + $0xc8] sm:$0xff] }
  0x2e   :  { %500 = vmatpush3.bf16.msra.mxu0 %v499_v7  ;;  %v511_v33 = vpack.c.bf16 %v53_v29, %v52_v28  ;;  %v54_v34 = vld [vmem:[#allocation5 + $0x60] sm:$0xff]  ;;  %v55_v35 = vld [vmem:[#allocation5 + $0x68] sm:$0xff]  ;;  %v532_v36 = vpack.c.bf16 %v144_v32, %v143_v31  ;;  %v145_v37 = vld [vmem:[#allocation5 + $0xd0] sm:$0xff]  ;;  %p627_p6 = pnand %p626_p5, %p620_p2 }
  0x2f   :  { %501 = vmatprep.subr.bf16.mxu0 %v651_v0  ;;  %v146_v38 = vld [vmem:[#allocation5 + $0xd8] sm:$0xff]  ;;  %v514_v39 = vpack.c.bf16 %v55_v35, %v54_v34  ;;  %v56_v40 = vld [vmem:[#allocation5 + $0x70] sm:$0xff]  ;;  %v147_v43 = vld [vmem:[#allocation5 + $0xe0] sm:$0xff] }
  0x30   :  { %524 = vmatpush3.bf16.msra.mxu1 %v523_v18  ;;  %v57_v41 = vld [vmem:[#allocation5 + $0x78] sm:$0xff]  ;;  %v535_v42 = vpack.c.bf16 %v146_v38, %v145_v37  ;;  %v148_v44 = vld [vmem:[#allocation5 + $0xe8] sm:$0xff]  ;;  %v149_v48 = vld [vmem:[#allocation5 + $0xf0] sm:$0xff] }
  0x31   :  { %525 = vmatprep.subr.bf16.mxu1 %v651_v0  ;;  %v517_v45 = vpack.c.bf16 %v57_v41, %v56_v40  ;;  %v538_v46 = vpack.c.bf16 %v148_v44, %v147_v43  ;;  %v41_v47 = vld [vmem:[#allocation2] sm:$0xf]  ;;  %v228_v51 = vld [vmem:[#allocation5 + $0x100] sm:$0xff]  ;;  %v229_v52 = vld [vmem:[#allocation5 + $0x108] sm:$0xff] }
  0x32   :  { %503 = vmatpush3.bf16.msra.mxu0 %v502_v14  ;;  %v150_v49 = vld [vmem:[#allocation5 + $0xf8] sm:$0xff]  ;;  %v230_v53 = vld [vmem:[#allocation5 + $0x110] sm:$0xff]  ;;  %v544_v54 = vpack.c.bf16 %v229_v52, %v228_v51  ;;  %v232_v57 = vld [vmem:[#allocation5 + $0x120] sm:$0xff] }
  0x33   :  { %504 = vmatprep.subr.bf16.mxu0 %v651_v0  ;;  %v541_v50 = vpack.c.bf16 %v150_v49, %v149_v48  ;;  %v231_v55 = vld [vmem:[#allocation5 + $0x118] sm:$0xff]  ;;  %v233_v58 = vld [vmem:[#allocation5 + $0x128] sm:$0xff]  ;;  %v234_v60 = vld [vmem:[#allocation5 + $0x130] sm:$0xff] }
  0x34   :  { %527 = vmatpush3.bf16.msra.mxu1 %v526_v24  ;;  %v547_v56 = vpack.c.bf16 %v231_v55, %v230_v53  ;;  %v550_v59 = vpack.c.bf16 %v233_v58, %v232_v57  ;;  %v235_v61 = vld [vmem:[#allocation5 + $0x138] sm:$0xff]  ;;  %v236_v63 = vld [vmem:[#allocation5 + $0x140] sm:$0xff]  ;;  %v238_v3 = vld [vmem:[#allocation5 + $0x150] sm:$0xff] }
  0x35   :  { %528 = vmatprep.subr.bf16.mxu1 %v651_v0  ;;  %v553_v62 = vpack.c.bf16 %v235_v61, %v234_v60  ;;  %v239_v4 = vld [vmem:[#allocation5 + $0x158] sm:$0xff]  ;;  %v240_v6 = vld [vmem:[#allocation5 + $0x160] sm:$0xff]  ;;  %v241_v7 = vld [vmem:[#allocation5 + $0x168] sm:$0xff] }
  0x36   :  { %506 = vmatpush3.bf16.msra.mxu0 %v505_v21  ;;  %v559_v5 = vpack.c.bf16 %v239_v4, %v238_v3  ;;  %v562_v8 = vpack.c.bf16 %v241_v7, %v240_v6  ;;  %v336_v9 = vld [vmem:[%s759_s2] ss:$0 sm:$0xff]  ;;  %v242_v14 = vld [vmem:[#allocation5 + $0x170] sm:$0xff]  ;;  %v337_v17 = vld [vmem:[%s759_s2 + $0x1] ss:$0 sm:$0xff] }
  0x37   :  { %507 = vmatprep.subr.bf16.mxu0 %v651_v0  ;;  %v243_v15 = vld [vmem:[#allocation5 + $0x178] sm:$0xff] }
  0x38   :  { %530 = vmatpush3.bf16.msra.mxu1 %v529_v30  ;;  %v565_v16 = vpack.c.bf16 %v243_v15, %v242_v14  ;;  %v338_v21 = vld [vmem:[%s759_s2 + $0x2] ss:$0 sm:$0xff] }
  0x39   :  { %531 = vmatprep.subr.bf16.mxu1 %v651_v0 }
  0x3a   :  { %509 = vmatpush3.bf16.msra.mxu0 %v508_v27 }
  0x3b   :  { %510 = vmatprep.subr.bf16.mxu0 %v651_v0 }
  0x3c   :  { %533 = vmatpush3.bf16.msra.mxu1 %v532_v36 }
  0x3d   :  { %534 = vmatprep.subr.bf16.mxu1 %v651_v0 }
  0x3e   :  { %512 = vmatpush3.bf16.msra.mxu0 %v511_v33 }
  0x3f   :  { %513 = vmatprep.subr.bf16.mxu0 %v651_v0 }
  0x40   :  { %536 = vmatpush3.bf16.msra.mxu1 %v535_v42 }
  0x41   :  { %537 = vmatprep.subr.bf16.mxu1 %v651_v0 }
  0x42   :  { %515 = vmatpush3.bf16.msra.mxu0 %v514_v39 }
  0x43   :  { %516 = vmatprep.subr.bf16.mxu0 %v651_v0 }
  0x44   :  { %539 = vmatpush3.bf16.msra.mxu1 %v538_v46 }
  0x45   :  { %540 = vmatprep.subr.bf16.mxu1 %v651_v0 }
  0x46   :  { %518 = vmatpush3.bf16.msra.mxu0 %v517_v45 }
  0x47   :  { %543 = vmatprep.subr.bf16.mxu0 %v651_v0 }
  0x48   :  { %542 = vmatpush3.bf16.msra.mxu1 %v541_v50 }
  0x49   :  { %423 = vmatmul.mubr.f32.vlgmr.msra.gmra.mrb[0].mxu0 %v41_v47 }
  0x4a   :  { %492 = vmatprep.mubr.msk.f32.mxu0 %vm652_vm0, %v653_v1  ;;  %545 = vmatpush3.bf16.msra.mxu0 %v544_v54  ;;  %v237_v1 = vld [vmem:[#allocation5 + $0x148] sm:$0xff] }
  0x4b   :  { %546 = vmatprep.subr.bf16.mxu0 %v651_v0  ;;  %v556_v2 = vpack.c.bf16 %v237_v1, %v236_v63 }
  0x4e   :  { %548 = vmatpush3.bf16.msra.mxu0 %v547_v56 }
  0x4f   :  { %549 = vmatprep.subr.bf16.mxu0 %v651_v0 }
  0x52   :  { %551 = vmatpush3.bf16.msra.mxu0 %v550_v59 }
  0x53   :  { %552 = vmatprep.subr.bf16.mxu0 %v651_v0 }
  0x56   :  { %554 = vmatpush3.bf16.msra.mxu0 %v553_v62 }
  0x57   :  { %555 = vmatprep.subr.bf16.mxu0 %v651_v0 }
  0x5a   :  { %557 = vmatpush3.bf16.msra.mxu0 %v556_v2 }
  0x5b   :  { %558 = vmatprep.subr.bf16.mxu0 %v651_v0 }
  0x5e   :  { %560 = vmatpush3.bf16.msra.mxu0 %v559_v5 }
  0x5f   :  { %561 = vmatprep.subr.bf16.mxu0 %v651_v0 }
  0x62   :  { %563 = vmatpush3.bf16.msra.mxu0 %v562_v8 }
  0x63   :  { %564 = vmatprep.subr.bf16.mxu0 %v651_v0 }
  0x66   :  { %566 = vmatpush3.bf16.msra.mxu0 %v565_v16 }
 0x11c   :  { %v129_v10 = vpop.f32.mrb[0].mxu0 }
 0x11d   :  { %v130_v11 = vadd.f32 %v336_v9, %v129_v10  ;;  %v424_v12 = vpop.f32.mrb[1].mxu0 }
 0x11f   :  { %v133_v13 = vmax.f32 %v130_v11, 0.0 }
 0x121   :  { %458 = vmatmul.mubr.f32.vlgmr.msra.gmra.mrb[0].mxu1 %v133_v13 }
 0x1f4   :  { %v222_v18 = vpop.f32.mrb[0].mxu1 }
 0x1f5   :  { %v223_v19 = vadd.f32 %v337_v17, %v222_v18  ;;  %v459_v0 = vpop.f32.mrb[1].mxu1 }
 0x1f7   :  { %v226_v20 = vmax.f32 %v223_v19, 0.0 }
 0x1f9   :  { %493 = vmatmul.mubr.f32.vlgmr.msra.gmra.mrb[2].mxu0 %v226_v20 }
 0x2cc   :  { %v315_v22 = vpop.f32.mrb[2].mxu0 }
 0x2cd   :  { %v316_v23 = vadd.f32 %v338_v21, %v315_v22  ;;  %v494_v24 = vpop.f32.mrb[3].mxu0 }
 0x2cf   :  { %319 = vst [vmem:[#allocation7] sm:$0xf] %v316_v23 }
 0x2d0   :  { %630 = shalt.err (!%p627_p6)
}
 0x2d1   :  { %s631_s20 = scalar_lea.hbm %s760_s3, 64 }
 0x2d2   :  { %p632_p7 = scmp.ne.s32.totalorder %s760_s3, %s631_s20  ;;  %p635_p8 = scmp.lt.u32.totalorder %s631_s20, %s760_s3 }
 0x2d4   :  { %p637_p9 = pnand %p635_p8, %p632_p7 }
 0x2d6   :  { %640 = shalt.err (!%p637_p9)
}
 0x2d7   :  { %329 = dma.vmem_to_hbm [thread:$0]  %s327_s16, 64, %s760_s3, [#allocation4]  }
 0x2d8   :  { %645 = dma.done.wait [#allocation4], 64  }
 0x2d9   :  { %646 = vsyncadd [#allocation4], 4294967232 }
 0x2da   :  { %333 = vsyncpa [#allocation3], 1 }
 0x2db   :  { %334 = vsyncpa [#allocation6], 1 }
 0x2dc   :  { %335 = vsyncpa [#allocation4], 1 }

</bundles_post_ra>
